<compile_context>
chip_gen: v7x
topology: tpu7x:2x2x1
jax: 0.10.0
libtpu: 0.0.40
codegen_flags: <defaults>
</compile_context>

<pallas_src>
import functools

import jax
import jax.numpy as jnp
from jax.experimental import pallas as pl
from jax.experimental.pallas import tpu as pltpu

LANE = 128
SUBLANE = 8


def _round_up(x, m):
    return (x + m - 1) // m * m


def _fused_mlp_kernel(x_ref, w_ref, b_ref, o_ref, *, n_layers, activation, in_pad, out_dim):
    # x_ref : (TILE_M, in_pad)      compact input tile (true feature width, sublane aligned)
    # w_ref : (L, W_pad, W_pad)     zero-padded weight stack, VMEM-resident across grid steps
    # b_ref : (L, 1, W_pad)         zero-padded biases
    # o_ref : (TILE_M, out_dim)     compact output tile (true output width)
    #
    # The running activation `h` is a traced value (compiler-managed VMEM), so there are no
    # redundant full-tile copies at entry/exit.
    # TODO(synk): for very deep nets switch this unrolled Python loop to lax.fori_loop with
    # dynamic w_ref[l] indexing to bound code size / compile time.
    h = x_ref[...]
    for l in range(n_layers):
        if l == 0:
            # Only the first in_pad rows of the padded first-layer weight are real;
            # slicing the VMEM ref is free and lets us feed the compact x directly.
            w = w_ref[0, :in_pad, :]
        else:
            w = w_ref[l]
        y = jnp.dot(h.astype(w_ref.dtype), w, preferred_element_type=jnp.float32)
        y = y + b_ref[l].astype(jnp.float32)
        if l < n_layers - 1:
            if activation == "relu":
                h = jnp.maximum(y, 0.0)
            else:
                # Padded lanes give sigmoid(0)=0.5 but hit exactly-zero weight rows next
                # layer, so they contribute nothing (invariant: padded weight rows are 0).
                h = jax.nn.sigmoid(y)
        else:
            # Compact store: only the true out_dim columns are written back to HBM.
            o_ref[...] = y[:, :out_dim].astype(o_ref.dtype)


def init_simple_nn_params(key, input_dim, hidden_layers, hidden_size, out_dim=2):
    """Deterministic init mimicking nn.Linear's U(-1/sqrt(fan_in), 1/sqrt(fan_in)).

    Weights stored as (in_features, out_features) (already transposed vs. PyTorch).
    """
    params = []
    prev = input_dim
    dims = [hidden_size] * hidden_layers + [out_dim]
    for d in dims:
        key, kw, kb = jax.random.split(key, 3)
        bound = 1.0 / jnp.sqrt(jnp.float32(prev))
        w = jax.random.uniform(kw, (prev, d), jnp.float32, -bound, bound)
        b = jax.random.uniform(kb, (d,), jnp.float32, -bound, bound)
        params.append((w, b))
        prev = d
    return params


def prepare_simple_nn_weights(params, mxu_dtype=jnp.float32):
    """One-time: zero-pad + stack all layer weights/biases (hoisted out of the forward path).

    Set mxu_dtype=jnp.bfloat16 on v6e/v7x for larger, compute-bound hidden sizes (halves the
    resident weight stack; f32 epilogue is kept in the kernel).  Note v7x's MXU has no int
    paths, so do not plan an int8 weight variant.
    """
    n_layers = len(params)
    in_dim = params[0][0].shape[0]
    out_dim = params[-1][0].shape[1]
    dims = [in_dim] + [w.shape[1] for (w, _) in params]
    w_pad = _round_up(max(dims), LANE)

    w_stack = jnp.zeros((n_layers, w_pad, w_pad), jnp.float32)
    b_stack = jnp.zeros((n_layers, 1, w_pad), jnp.float32)
    for l, (w, b) in enumerate(params):
        w_stack = w_stack.at[l, : w.shape[0], : w.shape[1]].set(w)
        b_stack = b_stack.at[l, 0, : b.shape[0]].set(b)

    return {
        "w_stack": w_stack.astype(mxu_dtype),
        "b_stack": b_stack,
        "in_dim": in_dim,
        "out_dim": out_dim,
        "w_pad": w_pad,
        "n_layers": n_layers,
    }


def simple_nn_forward(x, prepared, activation="relu", dropout=0.0, tile_m=4096):
    """Fused forward pass matching SimpleNN.forward (inference).

    x: (M, input_dim) f32; prepared: output of prepare_simple_nn_weights().
    """
    # TODO(synk): dropout > 0 (training-mode nn.Dropout) not implemented; inference dropout is identity.
    del dropout
    M, in_dim = x.shape
    assert in_dim == prepared["in_dim"]
    n_layers = prepared["n_layers"]
    out_dim = prepared["out_dim"]
    w_pad = prepared["w_pad"]
    w_stack = prepared["w_stack"]
    b_stack = prepared["b_stack"]

    # Input feature width: only round up to a sublane multiple (no 128-lane padding in HBM).
    in_pad = _round_up(in_dim, SUBLANE)

    # Batch tiling: big tiles (amortize ~0.35us/step pipeline overhead), chosen adaptively so
    # the padded tail stays within a few sublanes.  Force >=2 grid steps once the batch is
    # large enough so v7x's 2 TensorCores both get work (no effect on single-TC v5e/v6e).
    m8 = _round_up(M, SUBLANE)
    n_tiles = max(1, pl.cdiv(m8, tile_m))
    if n_tiles == 1 and m8 >= 2048:
        n_tiles = 2
    tile_m = _round_up(pl.cdiv(m8, n_tiles), SUBLANE)
    m_pad = n_tiles * tile_m

    if m_pad != M or in_pad != in_dim:
        x_in = jnp.zeros((m_pad, in_pad), jnp.float32).at[:M, :in_dim].set(x)
    else:
        x_in = x

    # VMEM budget.  BlockSpec double-buffers every block (even constant-index weights), so
    # count the weight/bias stacks twice; intermediate activations are compiler-managed VMEM.
    itemsize_w = jnp.dtype(w_stack.dtype).itemsize
    weight_bytes = n_layers * w_pad * w_pad * itemsize_w
    bias_bytes = n_layers * w_pad * 4
    io_bytes = 2 * tile_m * (in_pad + out_dim) * 4       # double-buffered x / out tiles
    act_bytes = 2 * tile_m * w_pad * 4                   # live traced activations
    vmem_need = 2 * (weight_bytes + bias_bytes) + io_bytes + act_bytes
    # Hard guard for the resident-weight design: must fit v7x's 64 MiB physical VMEM
    # (with headroom).  Larger hidden sizes need per-layer weight streaming instead.
    if 2 * (weight_bytes + bias_bytes) > (40 << 20):
        raise ValueError(
            "Resident weight stack too large for v7x VMEM; stream weights per layer "
            "(add an 'arbitrary' grid axis over L) for this hidden size."
        )
    vmem_limit = int(min(max(2 * vmem_need, 8 << 20), 48 << 20))

    flops = 2 * m_pad * w_pad * (in_pad + (n_layers - 1) * w_pad)
    transcendentals = 0 if activation == "relu" else m_pad * w_pad * (n_layers - 1)
    bytes_accessed = (
        m_pad * in_pad * 4            # compact x in
        + m_pad * out_dim * 4         # compact out
        + weight_bytes + bias_bytes
    )

    out = pl.pallas_call(
        functools.partial(
            _fused_mlp_kernel,
            n_layers=n_layers,
            activation=activation,
            in_pad=in_pad,
            out_dim=out_dim,
        ),
        out_shape=jax.ShapeDtypeStruct((m_pad, out_dim), jnp.float32),
        grid_spec=pltpu.PrefetchScalarGridSpec(
            num_scalar_prefetch=0,
            grid=(n_tiles,),
            in_specs=[
                pl.BlockSpec((tile_m, in_pad), lambda i: (i, 0)),
                pl.BlockSpec((n_layers, w_pad, w_pad), lambda i: (0, 0, 0)),
                pl.BlockSpec((n_layers, 1, w_pad), lambda i: (0, 0, 0)),
            ],
            out_specs=pl.BlockSpec((tile_m, out_dim), lambda i: (i, 0)),
        ),
        compiler_params=pltpu.CompilerParams(
            dimension_semantics=("parallel",),
            vmem_limit_bytes=vmem_limit,
        ),
        cost_estimate=pl.CostEstimate(
            flops=int(flops),
            transcendentals=int(transcendentals),
            bytes_accessed=int(bytes_accessed),
        ),
    )(x_in, w_stack, b_stack)

    return out[:M] if m_pad != M else out


def _reference_forward(x, params, activation="relu"):
    h = x
    for i, (w, b) in enumerate(params):
        h = h @ w + b
        if i < len(params) - 1:
            h = jnp.maximum(h, 0.0) if activation == "relu" else jax.nn.sigmoid(h)
    return h


if __name__ == "__main__":
    # Small shapes consistent with the module: input_dim=32, hidden_layers=2, hidden_size=32, out=2.
    input_dim, hidden_layers, hidden_size = 32, 2, 32

    key = jax.random.PRNGKey(0)
    key, kx1, kx2, kp = jax.random.split(key, 4)
    params = init_simple_nn_params(kp, input_dim, hidden_layers, hidden_size)
    prepared = prepare_simple_nn_weights(params, mxu_dtype=jnp.float32)

    # Check 1: relu, batch=8 (no padding path).
    x1 = jax.random.normal(kx1, (8, input_dim), jnp.float32)
    out1 = jax.block_until_ready(simple_nn_forward(x1, prepared, activation="relu"))
    ref1 = _reference_forward(x1, params, "relu")
    assert out1.shape == (8, 2)
    assert jnp.allclose(out1, ref1, atol=1e-5, rtol=1e-5)

    # Check 2: sigmoid, batch=20 (exercises the ragged-row padding path).
    x2 = jax.random.normal(kx2, (20, input_dim), jnp.float32)
    out2 = jax.block_until_ready(simple_nn_forward(x2, prepared, activation="sigmoid"))
    ref2 = _reference_forward(x2, params, "sigmoid")
    assert out2.shape == (20, 2)
    assert jnp.allclose(out2, ref2, atol=1e-5, rtol=1e-5)

    print("KERNEL_OK")
</pallas_src>

<mosaic_0001>
module attributes {stable_mosaic.version = 11 : i64} {
  func.func @_fused_mlp_kernel(%arg0: i32, %arg1: memref<8x32xf32, #tpu.memory_space<vmem>>, %arg2: memref<3x128x128xf32, #tpu.memory_space<vmem>>, %arg3: memref<3x1x128xf32, #tpu.memory_space<vmem>>, %arg4: memref<8x2xf32, #tpu.memory_space<vmem>>) attributes {dimension_semantics = [#tpu.dimension_semantics<parallel>], iteration_bounds = array<i64: 1>, scalar_prefetch = 0 : i64, scratch_operands = 0 : i64, tpu.core_type = #tpu.core_type<tc>, window_params = [{transform_indices = @transform_0, window_bounds = array<i64: 8, 32>}, {pipeline_mode = #tpu.pipeline_mode<synchronous>, transform_indices = @transform_1, window_bounds = array<i64: 3, 128, 128>}, {pipeline_mode = #tpu.pipeline_mode<synchronous>, transform_indices = @transform_2, window_bounds = array<i64: 3, 1, 128>}, {transform_indices = @transform_3, window_bounds = array<i64: 8, 2>}]} {
    %c0 = arith.constant 0 : index
    %c0_0 = arith.constant 0 : index
    %0 = vector.load %arg1[%c0, %c0_0] : memref<8x32xf32, #tpu.memory_space<vmem>>, vector<8x32xf32>
    %c0_1 = arith.constant 0 : index
    %c0_2 = arith.constant 0 : index
    %c0_3 = arith.constant 0 : index
    %1 = vector.load %arg2[%c0_1, %c0_2, %c0_3] : memref<3x128x128xf32, #tpu.memory_space<vmem>>, vector<1x32x128xf32>
    %2 = vector.shape_cast %1 : vector<1x32x128xf32> to vector<32x128xf32>
    %cst = arith.constant dense<0.000000e+00> : vector<8x128xf32>
    %3 = tpu.matmul %0, %2, %cst {dimension_numbers = #tpu.dot_dimension_numbers<[1], [0], [0], [1], [0, 0, 1, 1], [], []>} : vector<8x32xf32>, vector<32x128xf32>, vector<8x128xf32> -> vector<8x128xf32>
    %c0_4 = arith.constant 0 : index
    %c0_5 = arith.constant 0 : index
    %c0_6 = arith.constant 0 : index
    %4 = vector.load %arg3[%c0_4, %c0_5, %c0_6] : memref<3x1x128xf32, #tpu.memory_space<vmem>>, vector<1x1x128xf32>
    %5 = vector.shape_cast %4 : vector<1x1x128xf32> to vector<1x128xf32>
    %6 = vector.broadcast %5 : vector<1x128xf32> to vector<8x128xf32>
    %7 = arith.addf %3, %6 : vector<8x128xf32>
    %cst_7 = arith.constant 0.000000e+00 : f32
    %8 = vector.broadcast %cst_7 : f32 to vector<8x128xf32>
    %9 = arith.maximumf %7, %8 : vector<8x128xf32>
    %c1 = arith.constant 1 : index
    %c0_8 = arith.constant 0 : index
    %c0_9 = arith.constant 0 : index
    %10 = vector.load %arg2[%c1, %c0_8, %c0_9] : memref<3x128x128xf32, #tpu.memory_space<vmem>>, vector<1x128x128xf32>
    %11 = vector.shape_cast %10 : vector<1x128x128xf32> to vector<128x128xf32>
    %cst_10 = arith.constant dense<0.000000e+00> : vector<8x128xf32>
    %12 = tpu.matmul %9, %11, %cst_10 {dimension_numbers = #tpu.dot_dimension_numbers<[1], [0], [0], [1], [0, 0, 1, 1], [], []>} : vector<8x128xf32>, vector<128x128xf32>, vector<8x128xf32> -> vector<8x128xf32>
    %c1_11 = arith.constant 1 : index
    %c0_12 = arith.constant 0 : index
    %c0_13 = arith.constant 0 : index
    %13 = vector.load %arg3[%c1_11, %c0_12, %c0_13] : memref<3x1x128xf32, #tpu.memory_space<vmem>>, vector<1x1x128xf32>
    %14 = vector.shape_cast %13 : vector<1x1x128xf32> to vector<1x128xf32>
    %15 = vector.broadcast %14 : vector<1x128xf32> to vector<8x128xf32>
    %16 = arith.addf %12, %15 : vector<8x128xf32>
    %cst_14 = arith.constant 0.000000e+00 : f32
    %17 = vector.broadcast %cst_14 : f32 to vector<8x128xf32>
    %18 = arith.maximumf %16, %17 : vector<8x128xf32>
    %c2 = arith.constant 2 : index
    %c0_15 = arith.constant 0 : index
    %c0_16 = arith.constant 0 : index
    %19 = vector.load %arg2[%c2, %c0_15, %c0_16] : memref<3x128x128xf32, #tpu.memory_space<vmem>>, vector<1x128x128xf32>
    %20 = vector.shape_cast %19 : vector<1x128x128xf32> to vector<128x128xf32>
    %cst_17 = arith.constant dense<0.000000e+00> : vector<8x128xf32>
    %21 = tpu.matmul %18, %20, %cst_17 {dimension_numbers = #tpu.dot_dimension_numbers<[1], [0], [0], [1], [0, 0, 1, 1], [], []>} : vector<8x128xf32>, vector<128x128xf32>, vector<8x128xf32> -> vector<8x128xf32>
    %c2_18 = arith.constant 2 : index
    %c0_19 = arith.constant 0 : index
    %c0_20 = arith.constant 0 : index
    %22 = vector.load %arg3[%c2_18, %c0_19, %c0_20] : memref<3x1x128xf32, #tpu.memory_space<vmem>>, vector<1x1x128xf32>
    %23 = vector.shape_cast %22 : vector<1x1x128xf32> to vector<1x128xf32>
    %24 = vector.broadcast %23 : vector<1x128xf32> to vector<8x128xf32>
    %25 = arith.addf %21, %24 : vector<8x128xf32>
    %26 = vector.extract_strided_slice %25 {offsets = [0, 0], sizes = [8, 2], strides = [1, 1]} : vector<8x128xf32> to vector<8x2xf32>
    %c0_21 = arith.constant 0 : index
    %c0_22 = arith.constant 0 : index
    %27 = vector.load %arg4[%c0_21, %c0_22] : memref<8x2xf32, #tpu.memory_space<vmem>>, vector<8x2xf32>
    tpu.vector_store %arg4[%c0_21, %c0_22], %26 {strides = array<i32>} : memref<8x2xf32, #tpu.memory_space<vmem>>, vector<8x2xf32>,
    return
  }
  func.func @transform_0(%arg0: i32) -> (i32, i32) {
    %c0_i32 = arith.constant 0 : i32
    %c0_i32_0 = arith.constant 0 : i32
    return %arg0, %c0_i32 : i32, i32
  }
  func.func @transform_1(%arg0: i32) -> (i32, i32, i32) {
    %c0_i32 = arith.constant 0 : i32
    %c0_i32_0 = arith.constant 0 : i32
    %c0_i32_1 = arith.constant 0 : i32
    %c0_i32_2 = arith.constant 0 : i32
    return %c0_i32, %c0_i32_0, %c0_i32_1 : i32, i32, i32
  }
  func.func @transform_2(%arg0: i32) -> (i32, i32, i32) {
    %c0_i32 = arith.constant 0 : i32
    %c0_i32_0 = arith.constant 0 : i32
    %c0_i32_1 = arith.constant 0 : i32
    %c0_i32_2 = arith.constant 0 : i32
    return %c0_i32, %c0_i32_0, %c0_i32_1 : i32, i32, i32
  }
  func.func @transform_3(%arg0: i32) -> (i32, i32) {
    %c0_i32 = arith.constant 0 : i32
    %c0_i32_0 = arith.constant 0 : i32
    return %arg0, %c0_i32 : i32, i32
  }
}

</mosaic_0001>

<bundles_post_ra>
// kernel: tpu_custom_call.1
= control target key start
LH: loop header
LB: loop body
LE: loop exit
PB: predicated region body
PF: predicated region fallthrough
CT: control target
= control target key end

     0   :  { %8 = vsyncpa [#allocation3], 0  ;;  %s652_s0 = inlined_call_operand.hbm [shape: f32[8,32], index: 0, kind: input, shape index: {}]   ;;  %s653_s1 = inlined_call_operand.hbm [shape: f32[3,128,128], index: 1, kind: input, shape index: {}]   ;;  %s654_s2 = inlined_call_operand.vmem [shape: f32[3,1,128], index: 2, kind: input, shape index: {}]   ;;  %s655_s3 = inlined_call_operand.vmem [shape: f32[8,2], index: 3, kind: output, shape index: {}]  }
   0x1   :  { %9 = vsyncpa [#allocation5], 0  ;;  %s561_s12 = smov [#allocation2]   ;;  %s562_s14 = smov [#allocation4]  }
   0x2   :  { %s16_s13 = sshll.u32 %s561_s12, 4  ;;  %s25_s15 = sshll.u32 %s562_s14, 4  ;;  %s17_s13 = int_to_ptr.vmem [resolvable:$true] %s16_s13  ;;  %s588_s15 = int_to_ptr.vmem [resolvable:$true] %s25_s15 }
   0x3   :  { %s513_s18 = scalar_lea.hbm %s652_s0, 128 }
   0x4   :  { %p514_p0 = scmp.ne.s32.totalorder %s652_s0, %s513_s18  ;;  %p517_p1 = scmp.lt.u32.totalorder %s513_s18, %s652_s0 }
   0x6   :  { %p519_p2 = pnand %p517_p1, %p514_p0 }
   0x8   :  { %522 = shalt.err (!%p519_p2)
}
   0x9   :  { %s523_s23 = scalar_lea.vmem %s17_s13, 128  ;;  %p528_p4 = scmp.lt.s32.totalorder %s17_s13, %s17_s13 }
   0xa   :  { %p524_p3 = scmp.ne.s32.totalorder %s17_s13, %s523_s23  ;;  %p529_p5 = scmp.lt.s32.totalorder %s523_s23, %s523_s23 }
   0xc   :  { %p530_p6 = por %p529_p5, %p528_p4 }
   0xe   :  { %p531_p7 = pnand %p530_p6, %p524_p3 }
  0x10   :  { %534 = shalt.err (!%p531_p7)
}
  0x11   :  { %19 = dma.hbm_to_vmem [thread:$0]  %s652_s0, 128, %s17_s13, [#allocation3]  }
  0x12   :  { %s535_s28 = scalar_lea.hbm %s653_s1, 6144 }
  0x13   :  { %p536_p8 = scmp.ne.s32.totalorder %s653_s1, %s535_s28  ;;  %p539_p9 = scmp.lt.u32.totalorder %s535_s28, %s653_s1 }
  0x15   :  { %p541_p10 = pnand %p539_p9, %p536_p8 }
  0x17   :  { %544 = shalt.err (!%p541_p10)
}
  0x18   :  { %s545_s6 = scalar_lea.vmem %s588_s15, 6144  ;;  %p550_p12 = scmp.lt.s32.totalorder %s588_s15, %s588_s15 }
  0x19   :  { %p546_p11 = scmp.ne.s32.totalorder %s588_s15, %s545_s6  ;;  %p551_p13 = scmp.lt.s32.totalorder %s545_s6, %s545_s6 }
  0x1b   :  { %p552_p0 = por %p551_p13, %p550_p12 }
  0x1d   :  { %p553_p1 = pnand %p552_p0, %p546_p11 }
  0x1f   :  { %556 = shalt.err (!%p553_p1)
}
  0x20   :  { %s563_s0 = smov 128   ;;  %s564_s7 = smov 8  }
  0x21   :  { %31 = dma.hbm_to_vmem [thread:$0]  %s653_s1, 6144, %s588_s15, [#allocation5], %s563_s0, %s563_s0, %s564_s7  }
  0x22   :  { %557 = dma.done.wait [#allocation3], 128  }
  0x23   :  { %558 = vsyncadd [#allocation3], 4294967168 }
  0x24   :  { %559 = dma.done.wait [#allocation5], 6144  }
  0x25   :  { %560 = vsyncadd [#allocation5], 4294961152  ;;  %v565_v0 = vmov 0.0|0.0   ;;  %vm566_vm0 = vmmov 0   ;;  %v567_v1 = vmov 0.0   ;;  %v41_v2 = vld [vmem:[#allocation4] sm:$0xff] }
  0x26   :  { %452 = vmatprep.subr.bf16.mxu0 %v565_v0  ;;  %379 = vmatprep.mubr.msk.f32.mxu0 %vm566_vm0, %v567_v1  ;;  %v42_v3 = vld [vmem:[#allocation4 + $0x8] sm:$0xff]  ;;  %v43_v4 = vld [vmem:[#allocation4 + $0x10] sm:$0xff]  ;;  %v44_v6 = vld [vmem:[#allocation4 + $0x18] sm:$0xff]  ;;  %vm52_vm1 = vcmask 261120   ;;  %vm318_vm2 = vcmask 15360  }
  0x27   :  { %458 = vmatprep.subr.bf16.mxu1 %v565_v0  ;;  %414 = vmatprep.mubr.msk.f32.mxu1 %vm566_vm0, %v567_v1  ;;  %v453_v5 = vpack.c.bf16 %v42_v3, %v41_v2  ;;  %v128_v7 = vld [vmem:[#allocation4 + $0x80] sm:$0xff]  ;;  %v129_v8 = vld [vmem:[#allocation4 + $0x88] sm:$0xff]  ;;  %v130_v9 = vld [vmem:[#allocation4 + $0x90] sm:$0xff]  ;;  %v456_v11 = vpack.c.bf16 %v44_v6, %v43_v4 }
  0x28   :  { %v131_v10 = vld [vmem:[#allocation4 + $0x98] sm:$0xff]  ;;  %v459_v12 = vpack.c.bf16 %v129_v8, %v128_v7  ;;  %v132_v14 = vld [vmem:[#allocation4 + $0xa0] sm:$0xff]  ;;  %v133_v15 = vld [vmem:[#allocation4 + $0xa8] sm:$0xff] }
  0x29   :  { %454 = vmatpush3.bf16.msra.mxu0 %v453_v5  ;;  %v462_v13 = vpack.c.bf16 %v131_v10, %v130_v9  ;;  %v40_v16 = vld [vmem:[#allocation2] sm:$0xff]  ;;  %v465_v17 = vpack.c.bf16 %v133_v15, %v132_v14  ;;  %v134_v18 = vld [vmem:[#allocation4 + $0xb0] sm:$0xff]  ;;  %v136_v21 = vld [vmem:[#allocation4 + $0xc0] sm:$0xff] }
  0x2a   :  { %455 = vmatprep.subr.bf16.mxu0 %v565_v0  ;;  %460 = vmatpush3.bf16.msra.mxu1 %v459_v12  ;;  %v135_v19 = vld [vmem:[#allocation4 + $0xb8] sm:$0xff]  ;;  %v137_v22 = vld [vmem:[#allocation4 + $0xc8] sm:$0xff]  ;;  %v138_v24 = vld [vmem:[#allocation4 + $0xd0] sm:$0xff] }
  0x2b   :  { %461 = vmatprep.subr.bf16.mxu1 %v565_v0  ;;  %v468_v20 = vpack.c.bf16 %v135_v19, %v134_v18  ;;  %v471_v23 = vpack.c.bf16 %v137_v22, %v136_v21  ;;  %v139_v25 = vld [vmem:[#allocation4 + $0xd8] sm:$0xff]  ;;  %v140_v27 = vld [vmem:[#allocation4 + $0xe0] sm:$0xff]  ;;  %v141_v28 = vld [vmem:[#allocation4 + $0xe8] sm:$0xff] }
  0x2c   :  { %v474_v26 = vpack.c.bf16 %v139_v25, %v138_v24  ;;  %v477_v29 = vpack.c.bf16 %v141_v28, %v140_v27  ;;  %v142_v30 = vld [vmem:[#allocation4 + $0xf0] sm:$0xff]  ;;  %v143_v31 = vld [vmem:[#allocation4 + $0xf8] sm:$0xff]  ;;  %v224_v33 = vld [vmem:[#allocation4 + $0x100] sm:$0xff] }
  0x2d   :  { %457 = vmatpush3.bf16.msra.mxu0 %v456_v11  ;;  %v480_v32 = vpack.c.bf16 %v143_v31, %v142_v30  ;;  %v225_v34 = vld [vmem:[#allocation4 + $0x108] sm:$0xff]  ;;  %v226_v35 = vld [vmem:[#allocation4 + $0x110] sm:$0xff]  ;;  %v227_v37 = vld [vmem:[#allocation4 + $0x118] sm:$0xff] }
  0x2e   :  { %482 = vmatprep.subr.bf16.mxu0 %v565_v0  ;;  %463 = vmatpush3.bf16.msra.mxu1 %v462_v13  ;;  %v483_v36 = vpack.c.bf16 %v225_v34, %v224_v33  ;;  %v486_v38 = vpack.c.bf16 %v227_v37, %v226_v35  ;;  %v228_v39 = vld [vmem:[#allocation4 + $0x120] sm:$0xff]  ;;  %v229_v40 = vld [vmem:[#allocation4 + $0x128] sm:$0xff]  ;;  %v230_v42 = vld [vmem:[#allocation4 + $0x130] sm:$0xff] }
  0x2f   :  { %464 = vmatprep.subr.bf16.mxu1 %v565_v0  ;;  %v489_v41 = vpack.c.bf16 %v229_v40, %v228_v39  ;;  %v231_v43 = vld [vmem:[#allocation4 + $0x138] sm:$0xff]  ;;  %v232_v45 = vld [vmem:[#allocation4 + $0x140] sm:$0xff]  ;;  %v233_v46 = vld [vmem:[#allocation4 + $0x148] sm:$0xff] }
  0x30   :  { %380 = vmatmul.mubr.msk.f32.vlgmr.msra.gmra.mrb[0].mxu0 %vm52_vm1, %v40_v16  ;;  %v492_v44 = vpack.c.bf16 %v231_v43, %v230_v42  ;;  %v495_v47 = vpack.c.bf16 %v233_v46, %v232_v45  ;;  %v234_v48 = vld [vmem:[#allocation4 + $0x150] sm:$0xff]  ;;  %v235_v49 = vld [vmem:[#allocation4 + $0x158] sm:$0xff]  ;;  %v236_v51 = vld [vmem:[#allocation4 + $0x160] sm:$0xff] }
  0x31   :  { %449 = vmatprep.mubr.msk.f32.mxu0 %vm566_vm0, %v567_v1  ;;  %484 = vmatpush3.bf16.msra.mxu0 %v483_v36  ;;  %v498_v50 = vpack.c.bf16 %v235_v49, %v234_v48  ;;  %v237_v52 = vld [vmem:[#allocation4 + $0x168] sm:$0xff]  ;;  %v326_v54 = vld [vmem:[%s654_s2] ss:$0 sm:$0xff]  ;;  %v239_v60 = vld [vmem:[#allocation4 + $0x178] sm:$0xff] }
  0x32   :  { %466 = vmatpush3.bf16.msra.mxu1 %v465_v17  ;;  %485 = vmatprep.subr.bf16.mxu0 %v565_v0  ;;  %v501_v53 = vpack.c.bf16 %v237_v52, %v236_v51  ;;  %v238_v59 = vld [vmem:[#allocation4 + $0x170] sm:$0xff] }
  0x33   :  { %467 = vmatprep.subr.bf16.mxu1 %v565_v0  ;;  %v504_v61 = vpack.c.bf16 %v239_v60, %v238_v59  ;;  %v329_v62 = vld [vmem:[%s654_s2 + $0x1] ss:$0 sm:$0xff]  ;;  %v331_v3 = vld [vmem:[%s654_s2 + $0x2] ss:$0 sm:$0xff] }
  0x35   :  { %487 = vmatpush3.bf16.msra.mxu0 %v486_v38 }
  0x36   :  { %469 = vmatpush3.bf16.msra.mxu1 %v468_v20  ;;  %488 = vmatprep.subr.bf16.mxu0 %v565_v0 }
  0x37   :  { %470 = vmatprep.subr.bf16.mxu1 %v565_v0 }
  0x39   :  { %490 = vmatpush3.bf16.msra.mxu0 %v489_v41 }
  0x3a   :  { %472 = vmatpush3.bf16.msra.mxu1 %v471_v23  ;;  %491 = vmatprep.subr.bf16.mxu0 %v565_v0 }
  0x3b   :  { %473 = vmatprep.subr.bf16.mxu1 %v565_v0 }
  0x3d   :  { %493 = vmatpush3.bf16.msra.mxu0 %v492_v44 }
  0x3e   :  { %475 = vmatpush3.bf16.msra.mxu1 %v474_v26  ;;  %494 = vmatprep.subr.bf16.mxu0 %v565_v0 }
  0x3f   :  { %476 = vmatprep.subr.bf16.mxu1 %v565_v0 }
  0x41   :  { %496 = vmatpush3.bf16.msra.mxu0 %v495_v47 }
  0x42   :  { %478 = vmatpush3.bf16.msra.mxu1 %v477_v29  ;;  %497 = vmatprep.subr.bf16.mxu0 %v565_v0 }
  0x43   :  { %479 = vmatprep.subr.bf16.mxu1 %v565_v0 }
  0x45   :  { %499 = vmatpush3.bf16.msra.mxu0 %v498_v50 }
  0x46   :  { %481 = vmatpush3.bf16.msra.mxu1 %v480_v32  ;;  %500 = vmatprep.subr.bf16.mxu0 %v565_v0 }
  0x49   :  { %502 = vmatpush3.bf16.msra.mxu0 %v501_v53 }
  0x4a   :  { %503 = vmatprep.subr.bf16.mxu0 %v565_v0 }
  0x4d   :  { %505 = vmatpush3.bf16.msra.mxu0 %v504_v61 }
 0x103   :  { %v122_v55 = vpop.f32.mrb[0].mxu0 }
 0x104   :  { %v123_v56 = vadd.f32 %v326_v54, %v122_v55  ;;  %v381_v57 = vpop.f32.mrb[1].mxu0 }
 0x106   :  { %v126_v58 = vmax.f32 %v123_v56, 0.0 }
 0x108   :  { %415 = vmatmul.mubr.f32.vlgmr.msra.gmra.mrb[0].mxu1 %v126_v58 }
 0x1db   :  { %v218_v63 = vpop.f32.mrb[0].mxu1 }
 0x1dc   :  { %v219_v1 = vadd.f32 %v329_v62, %v218_v63  ;;  %v416_v0 = vpop.f32.mrb[1].mxu1 }
 0x1de   :  { %v222_v2 = vmax.f32 %v219_v1, 0.0 }
 0x1e0   :  { %450 = vmatmul.mubr.f32.vlgmr.msra.gmra.mrb[2].mxu0 %v222_v2 }
 0x2b3   :  { %v314_v4 = vpop.f32.mrb[2].mxu0 }
 0x2b4   :  { %v315_v5 = vadd.f32 %v331_v3, %v314_v4  ;;  %v451_v6 = vpop.f32.mrb[3].mxu0 }
 0x2b6   :  { %319 = vst.msk [vmem:[%s655_s3] sm:$0xff] %vm318_vm2, %v315_v5 }
 0x2b7   :  { %324 = vsyncpa [#allocation3], 1 }
 0x2b8   :  { %325 = vsyncpa [#allocation5], 1 }

</bundles_post_ra>
